<compile_context>
chip_gen: v7x
topology: tpu7x:2x2x1
jax: 0.10.0
libtpu: 0.0.40
codegen_flags: <defaults>
</compile_context>

<pallas_src>
import math

import jax
import jax.numpy as jnp
from jax.experimental import pallas as pl
from jax.experimental.pallas import tpu as pltpu


# Total live pipeline VMEM allowed: 2 buffers x (x block + pe block + out block).
_LIVE_VMEM_BUDGET = 8 * 1024 * 1024


def _round_up(v, m):
    return -(-v // m) * m


def _pe_add_kernel(x_ref, pe_ref, o_ref):
    # x/o: (B_blk, C, TL), pe: (1, C, TL) -- jnp broadcasting covers the batch.
    o_ref[...] = (x_ref[...] + pe_ref[...]).astype(o_ref.dtype)


def _pick_l_tile(L, rows_per_lane, itemsize):
    """Largest 128-multiple L-tile whose double-buffered blocks fit the VMEM
    budget.  `rows_per_lane` = total sublane rows resident per lane column per
    grid step, summed over all blocks.  Returns 0 if even 128 lanes don't fit."""
    l_pad = _round_up(L, 128)
    tl = (_LIVE_VMEM_BUDGET // (2 * rows_per_lane * itemsize)) // 128 * 128
    if tl < 128:
        return 0
    tl = min(tl, l_pad)
    # If a single tile would cover everything, split it in two so the parallel
    # tile axis has extent >= 2 (keeps both v7x TensorCores busy).
    if tl == l_pad and l_pad >= 256:
        tl = _round_up(-(-L // 2), 128)
    return tl


def add_positional_encoding(x, pe):
    """x: (B, C, L), pe: (1, C, max_len) with max_len >= L.  Returns x + pe[:, :, :L]."""
    B, C, L = x.shape
    assert pe.shape[0] == 1 and pe.shape[1] == C and pe.shape[2] >= L
    max_len = pe.shape[2]
    itemsize = max(x.dtype.itemsize, pe.dtype.itemsize)

    if L >= 128:
        # Lane-dense 128-multiple tiles; cdiv grid masks the ragged tail store.
        tl = _pick_l_tile(L, (2 * B + 1) * C, itemsize)
        if tl >= 128:
            # Preferred path: whole batch folded into the block; pe DMA'd once
            # per L-tile, grid steps cut by B.
            nl = pl.cdiv(L, tl)
            grid = (nl,)
            in_specs = [
                pl.BlockSpec((B, C, tl), lambda j: (0, 0, j)),   # x
                pl.BlockSpec((1, C, tl), lambda j: (0, 0, j)),   # pe
            ]
            out_specs = pl.BlockSpec((B, C, tl), lambda j: (0, 0, j))
            dims = ("parallel",)
        else:
            # Fallback (huge B*C): per-batch blocks, batch innermost so pe's
            # block index is constant across consecutive steps (re-DMA skipped).
            tl = _pick_l_tile(L, 3 * C, itemsize)
            tl = max(tl, 128)
            nl = pl.cdiv(L, tl)
            grid = (nl, B)
            in_specs = [
                pl.BlockSpec((1, C, tl), lambda j, b: (b, 0, j)),  # x
                pl.BlockSpec((1, C, tl), lambda j, b: (0, 0, j)),  # pe
            ]
            out_specs = pl.BlockSpec((1, C, tl), lambda j, b: (b, 0, j))
            dims = ("parallel", "arbitrary")
        pe_arg = pe
    else:
        # Tiny L (< 128): one full-dim block.  pe's last block dim must equal
        # its full dim, so slice it (cheap at this size) unless max_len == L.
        pe_arg = pe if max_len == L else jax.lax.slice(pe, (0, 0, 0), (1, C, L))
        grid = (1,)
        in_specs = [
            pl.BlockSpec((B, C, L), lambda j: (0, 0, 0)),
            pl.BlockSpec((1, C, L), lambda j: (0, 0, 0)),
        ]
        out_specs = pl.BlockSpec((B, C, L), lambda j: (0, 0, 0))
        dims = ("parallel",)

    return pl.pallas_call(
        _pe_add_kernel,
        out_shape=jax.ShapeDtypeStruct((B, C, L), x.dtype),
        grid=grid,
        in_specs=in_specs,
        out_specs=out_specs,
        compiler_params=pltpu.CompilerParams(dimension_semantics=dims),
    )(x, pe_arg)


# ----------------------------------------------------------------------------
# Module wrapper (matches the PyTorch PositionalEncoding init + forward)
# ----------------------------------------------------------------------------
class PositionalEncoding:
    def __init__(self, d_model, max_len, dtype=jnp.float32):
        position = jnp.arange(0, max_len, dtype=jnp.float32)[:, None]          # (max_len, 1)
        # NOTE: the ASFormer module deliberately uses log(max_len), not the
        # classic log(10000); we match the given PyTorch spec exactly.
        div_term = jnp.exp(jnp.arange(0, d_model, 2, dtype=jnp.float32)
                           * -(math.log(float(max_len)) / d_model))            # (d_model//2,)
        pe = jnp.zeros((max_len, d_model), jnp.float32)
        pe = pe.at[:, 0::2].set(jnp.sin(position * div_term))
        pe = pe.at[:, 1::2].set(jnp.cos(position * div_term))
        # (max_len, d_model) -> (1, d_model, max_len).  Store in the activation
        # dtype (e.g. bf16) to halve pe HBM traffic on this mem-bound add.
        self.pe = pe[None].transpose(0, 2, 1).astype(dtype)

    def __call__(self, x):
        return add_positional_encoding(x, self.pe)


# ----------------------------------------------------------------------------
# pure-JAX reference for a correctness check
# ----------------------------------------------------------------------------
def ref_forward(layer, x):
    return x + layer.pe[:, :, : x.shape[2]].astype(x.dtype)


# ----------------------------------------------------------------------------
if __name__ == "__main__":
    key = jax.random.PRNGKey(0)
    k1, k2, k3 = jax.random.split(key, 3)

    d_model, max_len = 64, 512
    layer = PositionalEncoding(d_model, max_len)

    cases = [
        (k1, 2, 256),   # lane-dense, batch-folded, 2 tiles
        (k2, 2, 100),   # tiny L (< 128) full-block fallback
        (k3, 2, 200),   # ragged L >= 128: cdiv grid, masked tail store
    ]
    for k, B, L in cases:
        x = jax.random.normal(k, (B, d_model, L), dtype=jnp.float32)
        out = jax.block_until_ready(layer(x))
        assert out.shape == (B, d_model, L)
        assert bool(jnp.allclose(out, ref_forward(layer, x), rtol=1e-6, atol=1e-6)), \
            f"mismatch vs reference (L={L})"

    print("KERNEL_OK")
</pallas_src>

<mosaic_0001>
module attributes {stable_mosaic.version = 11 : i64} {
  func.func @_pe_add_kernel(%arg0: i32, %arg1: memref<2x64x128xf32, #tpu.memory_space<vmem>>, %arg2: memref<1x64x128xf32, #tpu.memory_space<vmem>>, %arg3: memref<2x64x128xf32, #tpu.memory_space<vmem>>) attributes {dimension_semantics = [#tpu.dimension_semantics<parallel>], iteration_bounds = array<i64: 2>, scalar_prefetch = 0 : i64, scratch_operands = 0 : i64, tpu.core_type = #tpu.core_type<tc>, window_params = [{transform_indices = @transform_0, window_bounds = array<i64: 2, 64, 128>}, {transform_indices = @transform_1, window_bounds = array<i64: 1, 64, 128>}, {transform_indices = @transform_2, window_bounds = array<i64: 2, 64, 128>}]} {
    %c0 = arith.constant 0 : index
    %c0_0 = arith.constant 0 : index
    %c0_1 = arith.constant 0 : index
    %0 = vector.load %arg1[%c0, %c0_0, %c0_1] : memref<2x64x128xf32, #tpu.memory_space<vmem>>, vector<2x64x128xf32>
    %c0_2 = arith.constant 0 : index
    %c0_3 = arith.constant 0 : index
    %c0_4 = arith.constant 0 : index
    %1 = vector.load %arg2[%c0_2, %c0_3, %c0_4] : memref<1x64x128xf32, #tpu.memory_space<vmem>>, vector<1x64x128xf32>
    %2 = vector.broadcast %1 : vector<1x64x128xf32> to vector<2x64x128xf32>
    %3 = arith.addf %0, %2 : vector<2x64x128xf32>
    %c0_5 = arith.constant 0 : index
    %c0_6 = arith.constant 0 : index
    %c0_7 = arith.constant 0 : index
    %4 = vector.load %arg3[%c0_5, %c0_6, %c0_7] : memref<2x64x128xf32, #tpu.memory_space<vmem>>, vector<2x64x128xf32>
    tpu.vector_store %arg3[%c0_5, %c0_6, %c0_7], %3 {strides = array<i32>} : memref<2x64x128xf32, #tpu.memory_space<vmem>>, vector<2x64x128xf32>,
    return
  }
  func.func @transform_0(%arg0: i32) -> (i32, i32, i32) {
    %c0_i32 = arith.constant 0 : i32
    %c0_i32_0 = arith.constant 0 : i32
    %c0_i32_1 = arith.constant 0 : i32
    return %c0_i32, %c0_i32_0, %arg0 : i32, i32, i32
  }
  func.func @transform_1(%arg0: i32) -> (i32, i32, i32) {
    %c0_i32 = arith.constant 0 : i32
    %c0_i32_0 = arith.constant 0 : i32
    %c0_i32_1 = arith.constant 0 : i32
    return %c0_i32, %c0_i32_0, %arg0 : i32, i32, i32
  }
  func.func @transform_2(%arg0: i32) -> (i32, i32, i32) {
    %c0_i32 = arith.constant 0 : i32
    %c0_i32_0 = arith.constant 0 : i32
    %c0_i32_1 = arith.constant 0 : i32
    return %c0_i32, %c0_i32_0, %arg0 : i32, i32, i32
  }
}

</mosaic_0001>

<bundles_post_ra>
// kernel: tpu_custom_call.1
= control target key start
LH: loop header
LB: loop body
LE: loop exit
PB: predicated region body
PF: predicated region fallthrough
CT: control target
= control target key end

     0   :  { %7 = vsyncpa [#allocation3], 0  ;;  %s863_s0 = inlined_call_operand.hbm [shape: f32[2,64,256], index: 0, kind: input, shape index: {}]   ;;  %s864_s1 = inlined_call_operand.hbm [shape: f32[1,64,512], index: 1, kind: input, shape index: {}]   ;;  %s865_s2 = inlined_call_operand.hbm [shape: f32[2,64,256], index: 2, kind: output, shape index: {}]  }
   0x1   :  { %9 = vsyncpa [#allocation3 + $0x1], 0 }
   0x2   :  { %10 = vsyncpa [#allocation6], 0 }
   0x3   :  { %12 = vsyncpa [#allocation6 + $0x1], 0 }
   0x4   :  { %13 = vsyncpa [#allocation4], 0 }
   0x5   :  { %15 = vsyncpa [#allocation4 + $0x1], 0  ;;  %s595_s9 = smov 0   ;;  %s597_s10 = smov 0  }
   0x6   :  { %s599_s11 = smov 0   ;;  %s601_s12 = smov 0  }
   0x7 LB: > { %s616_s13 = sadd.s32 4294967295, %s568_s12   ;;  %s365_s14 = sadd.s32 4294967294, %s568_s12   ;;  %s568_s12 = sphi %s601_s12, %s882_s12   ;;  %s564_s11 = sphi %s599_s11, %s881_s11   ;;  %s560_s10 = sphi %s597_s10, %s880_s10   ;;  %s556_s9 = sphi %s595_s9, %s879_s9  }
   0x8   : > { %s620_s15 = sadd.s32 1, %s568_s12   ;;  %s28_s16 = sadd.s32 1, %s564_s11 }
   0x9   : > { %s25_s17 = ssub.s32 %s568_s12, %s620_s15  ;;  %p35_p0 = scmp.ne.s32.totalorder %s564_s11, %s560_s10 }
   0xa   : > { %p26_p1 = scmp.eq.s32.totalorder %s25_s17, 0  ;;  %p36_p2 = scmp.eq.s32.totalorder %s568_s12, 0 }
   0xb   : > { %p41_p3 = scmp.ne.s32.totalorder %s560_s10, %s556_s9  ;;  %p42_p4 = scmp.eq.s32.totalorder %s616_s13, 0 }
   0xc   : > { %s632_s18 = scalar_select %p26_p1, %s564_s11, %s28_s16  }
   0xd   : > { %p634_p5 = por %p36_p2, %p35_p0  ;;  %p638_p6 = por %p42_p4, %p41_p3 }
   0xe   : > { %p91_p7 = scmp.eq.s32.totalorder %s616_s13, 1  ;;  %p97_p8 = scmp.eq.s32.totalorder %s365_s14, 1 }
   0xf   : > { %s869_s20 = scalar_select %p638_p6, 1, 0 }
  0x10   : > { %p397_p10 = scmp.lt.s32.totalorder %s568_s12, 2  ;;  %p645_p11 = por %p91_p7, %p35_p0 }
  0x11   : > { %p649_p12 = por %p97_p8, %p41_p3  ;;  %s654_s23 = sand.u32 1, %s564_s11  }
  0x12   : > { %s870_s21 = scalar_select %p645_p11, 1, 0 }
  0x13   : > { %s871_s22 = scalar_select %p649_p12, 1, 0 }
  0x14   : > { %s369_s24 = sshll.u32 %s568_s12, 7  ;;  %s368_s25 = sshll.u32 %s654_s23, 7 }
  0x15   : > { %s663_s28 = scalar_lea.hbm %s863_s0, %s369_s24  ;;  %s121_s29 = scalar_lea.vmem [#allocation2], %s368_s25 }
  0x16   : > { %s127_s30 = sshll.u32 %s121_s29, 4  ;;  %p667_p13 = pnand %p397_p10, %p634_p5  ;;  %s671_s30 = int_to_ptr.vmem [resolvable:$true] %s127_s30 }
  0x17   : > { %s118_s4 = scalar_lea.sflag [#allocation3], %s654_s23  ;;  %s438_s5 = scalar_lea.hbm %s663_s28, 2048 }
  0x18   : > { %p439_p1 = scmp.ne.s32.totalorder %s663_s28, %s438_s5  ;;  %p440_p2 = pneg %p667_p13 }
  0x19   : > { %s443_s8 = scalar_lea.hbm %s863_s0, 4096  ;;  %p444_p5 = scmp.lt.u32.totalorder %s663_s28, %s863_s0 }
  0x1a   : > { %p441_p3 = pnand %p440_p2, %p439_p1  ;;  %p445_p7 = scmp.lt.u32.totalorder %s443_s8, %s438_s5 }
  0x1b   : > { %p447_p10 = scmp.lt.u32.totalorder %s438_s5, %s663_s28 }
  0x1c   : > { %p442_p4 = pneg %p441_p3  ;;  %p446_p8 = por %p445_p7, %p444_p5 }
  0x1e   : > { %p448_p9 = por %p447_p10, %p446_p8 }
  0x20   : > { %p449_p0 = pnand %p448_p9, %p442_p4 }
  0x22   : > { %452 = shalt.err (!%p449_p0)
}
  0x23   : > { %s453_s17 = scalar_lea.vmem %s671_s30, 2048  ;;  %s570_s19 = smov [#allocation2]  }
  0x24   : > { %p454_p1 = scmp.ne.s32.totalorder %s671_s30, %s453_s17  ;;  %s458_s25 = sshll.u32 %s570_s19, 4  ;;  %s459_s25 = int_to_ptr.vmem [resolvable:$false] %s458_s25 }
  0x25   : > { %s460_s26 = scalar_lea.vmem %s459_s25, 4096  ;;  %p461_p11 = scmp.lt.s32.totalorder %s671_s30, %s459_s25 }
  0x26   : > { %p456_p3 = pnand %p454_p1, %p440_p2  ;;  %p462_p5 = scmp.lt.s32.totalorder %s460_s26, %s453_s17 }
  0x28   : > { %p457_p12 = pneg %p456_p3  ;;  %p463_p7 = por %p462_p5, %p461_p11 }
  0x2a   : > { %p464_p8 = pnand %p463_p7, %p457_p12 }
  0x2c   : > { %467 = shalt.err (!%p464_p8)
}
  0x2d   : > { %s571_s27 = smov 256   ;;  %s572_s29 = smov 128  }
  0x2e   : > { %s573_s5 = smov 8   ;;  %p155_p9 = scmp.lt.s32.totalorder %s568_s12, 3 }
  0x2f   : > { %389 = dma.hbm_to_vmem [thread:$0]  (!%p667_p13), %s663_s28, 2048, %s671_s30, %s118_s4, %s571_s27, %s572_s29, %s573_s5  }
  0x30   : > { %s370_s6 = sshll.u32 %s654_s23, 6  ;;  %s711_s14 = scalar_lea.hbm %s864_s1, %s369_s24 }
  0x31   : > { %p873_p11 = scmp.ge.s32.totalorder %s568_s12, 1  ;;  %s141_s17 = scalar_lea.vmem [#allocation5], %s370_s6 }
  0x32   : > { %s147_s19 = sshll.u32 %s141_s17, 4  ;;  %s138_s28 = scalar_lea.sflag [#allocation6], %s654_s23  ;;  %s719_s19 = int_to_ptr.vmem [resolvable:$true] %s147_s19 }
  0x33   : > { %p715_p12 = pnand %p873_p11, %p155_p9  ;;  %s468_s30 = scalar_lea.hbm %s711_s14, 1024 }
  0x34   : > { %p469_p0 = scmp.ne.s32.totalorder %s711_s14, %s468_s30  ;;  %s473_s25 = scalar_lea.hbm %s864_s1, 4096 }
  0x35   : > { %p474_p1 = scmp.lt.u32.totalorder %s711_s14, %s864_s1  ;;  %p475_p3 = scmp.lt.u32.totalorder %s473_s25, %s468_s30 }
  0x36   : > { %p471_p4 = pnand %p469_p0, %p440_p2  ;;  %p477_p7 = scmp.lt.u32.totalorder %s468_s30, %s711_s14 }
  0x37   : > { %p476_p5 = por %p475_p3, %p474_p1 }
  0x38   : > { %p472_p10 = pneg %p471_p4 }
  0x39   : > { %p478_p8 = por %p477_p7, %p476_p5 }
  0x3b   : > { %p479_p9 = pnand %p478_p8, %p472_p10 }
  0x3d   : > { %482 = shalt.err (!%p479_p9)
}
  0x3e   : > { %s483_s6 = scalar_lea.vmem %s719_s19, 1024  ;;  %s574_s7 = smov [#allocation5]  }
  0x3f   : > { %p484_p11 = scmp.ne.s32.totalorder %s719_s19, %s483_s6  ;;  %s488_s8 = sshll.u32 %s574_s7, 4  ;;  %s489_s8 = int_to_ptr.vmem [resolvable:$false] %s488_s8 }
  0x40   : > { %s490_s17 = scalar_lea.vmem %s489_s8, 2048  ;;  %p491_p6 = scmp.lt.s32.totalorder %s719_s19, %s489_s8 }
  0x41   : > { %p486_p0 = pnand %p484_p11, %p440_p2  ;;  %p492_p1 = scmp.lt.s32.totalorder %s490_s17, %s483_s6 }
  0x43   : > { %p487_p4 = pneg %p486_p0  ;;  %p493_p3 = por %p492_p1, %p491_p6 }
  0x45   : > { %p494_p5 = pnand %p493_p3, %p487_p4 }
  0x47   : > { %497 = shalt.err (!%p494_p5)
}
  0x48   : > { %s575_s30 = smov 512   ;;  %159 = sbr.rel (%p715_p12) target bundleno = 112 (0x70), region = 28 }
  0x49   : > { %392 = dma.hbm_to_vmem [thread:$0]  (!%p667_p13), %s711_s14, 1024, %s719_s19, %s138_s28, %s575_s30, %s572_s29, %s573_s5  }
  0x4a   : > { %s752_s24 = sand.u32 (!%p715_p12), 1, %s560_s10   ;;  %p875_p6 = scmp.ne.s32.totalorder (!%p715_p12), %s869_s20, 0 }
  0x4b   : > { %s373_s4 = sshll.u32 (!%p715_p12), %s752_s24, 7  ;;  %s162_s25 = scalar_lea.sflag (!%p715_p12), [#allocation3], %s752_s24 }
  0x4c   : > { %s756_s26 = scalar_lea.vmem (!%p715_p12), [#allocation2], %s373_s4 }
  0x4f   : > { %543 = dma.done.wait (%p875_p6), %s162_s25, 2048  }
  0x50   : > { %545 = vsyncadd (%p875_p6), %s162_s25, 4294965248  ;;  %s374_s23 = sshll.u32 %s752_s24, 6  ;;  %s171_s3 = scalar_lea.sflag [#allocation6], %s752_s24 }
  0x51   : > { %s764_s29 = scalar_lea.vmem [#allocation5], %s374_s23 }
  0x52   : > { %547 = dma.done.wait (%p875_p6), %s171_s3, 1024  }
  0x53   : > { %549 = vsyncadd (%p875_p6), %s171_s3, 4294966272  ;;  %v200_v0 = vld [vmem:[%s756_s26] sm:$0xff]  ;;  %v201_v2 = vld [vmem:[%s756_s26 + $0x8] sm:$0xff]  ;;  %s779_s20 = scalar_lea.vmem [#allocation7], %s373_s4  ;;  %s377_s5 = sshll.u32 %s616_s13, 7 }
  0x54   : > { %v216_v1 = vld [vmem:[%s764_s29] sm:$0xff]  ;;  %v217_v4 = vld [vmem:[%s764_s29 + $0x8] sm:$0xff]  ;;  %v202_v5 = vld [vmem:[%s756_s26 + $0x10] sm:$0xff]  ;;  %s269_s14 = sshll.u32 %s779_s20, 4  ;;  %s804_s19 = scalar_lea.hbm %s865_s2, %s377_s5  ;;  %s810_s14 = int_to_ptr.vmem [resolvable:$true] %s269_s14 }
  0x55   : > { %v224_v3 = vadd.f32 %v216_v1, %v200_v0  ;;  %v218_v6 = vld [vmem:[%s764_s29 + $0x10] sm:$0xff]  ;;  %v225_v7 = vadd.f32 %v217_v4, %v201_v2  ;;  %v203_v9 = vld [vmem:[%s756_s26 + $0x18] sm:$0xff]  ;;  %v204_v11 = vld [vmem:[%s756_s26 + $0x20] sm:$0xff]  ;;  %s257_s28 = scalar_lea.sflag [#allocation4], %s752_s24  ;;  %s498_s27 = scalar_lea.vmem %s810_s14, 2048 }
  0x56   : > { %v226_v8 = vadd.f32 %v218_v6, %v202_v5  ;;  %v219_v10 = vld [vmem:[%s764_s29 + $0x18] sm:$0xff]  ;;  %v220_v13 = vld [vmem:[%s764_s29 + $0x20] sm:$0xff]  ;;  %v205_v14 = vld [vmem:[%s756_s26 + $0x28] sm:$0xff]  ;;  %p499_p13 = scmp.ne.s32.totalorder %s810_s14, %s498_s27  ;;  %p876_p2 = scmp.ne.s32.totalorder %s870_s21, 0 }
  0x57   : > { %240 = vst [vmem:[%s779_s20] sm:$0xff] %v224_v3  ;;  %v227_v12 = vadd.f32 %v219_v10, %v203_v9  ;;  %v221_v15 = vld [vmem:[%s764_s29 + $0x28] sm:$0xff]  ;;  %241 = vst [vmem:[%s779_s20 + $0x8] sm:$0xff] %v225_v7  ;;  %v228_v16 = vadd.f32 %v220_v13, %v204_v11  ;;  %v206_v18 = vld [vmem:[%s756_s26 + $0x30] sm:$0xff]  ;;  %s576_s6 = smov [#allocation7]  }
  0x58   : > { %242 = vst [vmem:[%s779_s20 + $0x10] sm:$0xff] %v226_v8  ;;  %v229_v17 = vadd.f32 %v221_v15, %v205_v14  ;;  %v222_v19 = vld [vmem:[%s764_s29 + $0x30] sm:$0xff]  ;;  %v207_v20 = vld [vmem:[%s756_s26 + $0x38] sm:$0xff]  ;;  %v208_v23 = vld [vmem:[%s756_s26 + $0x40] sm:$0xff]  ;;  %p500_p12 = pnand %p499_p13, %p876_p2  ;;  %s502_s7 = sshll.u32 %s576_s6, 4  ;;  %s503_s7 = int_to_ptr.vmem [resolvable:$false] %s502_s7 }
  0x59   : > { %243 = vst [vmem:[%s779_s20 + $0x18] sm:$0xff] %v227_v12  ;;  %v230_v21 = vadd.f32 %v222_v19, %v206_v18  ;;  %v223_v22 = vld [vmem:[%s764_s29 + $0x38] sm:$0xff]  ;;  %v209_v24 = vld [vmem:[%s756_s26 + $0x48] sm:$0xff]  ;;  %244 = vst [vmem:[%s779_s20 + $0x20] sm:$0xff] %v228_v16  ;;  %v232_v26 = vadd.f32 %v216_v1, %v208_v23  ;;  %s504_s8 = scalar_lea.vmem %s503_s7, 4096  ;;  %p505_p7 = scmp.lt.s32.totalorder %s810_s14, %s503_s7 }
  0x5a   : > { %245 = vst [vmem:[%s779_s20 + $0x28] sm:$0xff] %v229_v17  ;;  %v231_v25 = vadd.f32 %v223_v22, %v207_v20  ;;  %v233_v27 = vadd.f32 %v217_v4, %v209_v24  ;;  %v210_v28 = vld [vmem:[%s756_s26 + $0x50] sm:$0xff]  ;;  %v211_v29 = vld [vmem:[%s756_s26 + $0x58] sm:$0xff]  ;;  %v212_v30 = vld [vmem:[%s756_s26 + $0x60] sm:$0xff]  ;;  %p501_p10 = pneg %p500_p12  ;;  %p506_p8 = scmp.lt.s32.totalorder %s504_s8, %s498_s27 }
  0x5b   : > { %246 = vst [vmem:[%s779_s20 + $0x30] sm:$0xff] %v230_v21  ;;  %v234_v31 = vadd.f32 %v218_v6, %v210_v28  ;;  %v235_v32 = vadd.f32 %v219_v10, %v211_v29  ;;  %v236_v33 = vadd.f32 %v220_v13, %v212_v30  ;;  %v213_v34 = vld [vmem:[%s756_s26 + $0x68] sm:$0xff]  ;;  %v214_v35 = vld [vmem:[%s756_s26 + $0x70] sm:$0xff]  ;;  %v215_v36 = vld [vmem:[%s756_s26 + $0x78] sm:$0xff] }
  0x5c   : > { %247 = vst [vmem:[%s779_s20 + $0x38] sm:$0xff] %v231_v25  ;;  %248 = vst [vmem:[%s779_s20 + $0x40] sm:$0xff] %v232_v26  ;;  %v237_v37 = vadd.f32 %v221_v15, %v213_v34  ;;  %v238_v38 = vadd.f32 %v222_v19, %v214_v35  ;;  %v239_v39 = vadd.f32 %v223_v22, %v215_v36  ;;  %p507_p9 = por %p506_p8, %p505_p7 }
  0x5d   : > { %249 = vst [vmem:[%s779_s20 + $0x48] sm:$0xff] %v233_v27  ;;  %250 = vst [vmem:[%s779_s20 + $0x50] sm:$0xff] %v234_v31 }
  0x5e   : > { %251 = vst [vmem:[%s779_s20 + $0x58] sm:$0xff] %v235_v32  ;;  %252 = vst [vmem:[%s779_s20 + $0x60] sm:$0xff] %v236_v33  ;;  %p508_p11 = pnand %p507_p9, %p501_p10 }
  0x5f   : > { %253 = vst [vmem:[%s779_s20 + $0x68] sm:$0xff] %v237_v37  ;;  %254 = vst [vmem:[%s779_s20 + $0x70] sm:$0xff] %v238_v38 }
  0x60   : > { %255 = vst [vmem:[%s779_s20 + $0x78] sm:$0xff] %v239_v39 }
  0x61   : > { %511 = shalt.err (!%p508_p11)
}
  0x62   : > { %s512_s17 = scalar_lea.hbm %s804_s19, 2048  ;;  %s516_s25 = scalar_lea.hbm %s865_s2, 4096 }
  0x63   : > { %p513_p0 = scmp.ne.s32.totalorder %s804_s19, %s512_s17  ;;  %p517_p3 = scmp.lt.u32.totalorder %s804_s19, %s865_s2 }
  0x64   : > { %p518_p5 = scmp.lt.u32.totalorder %s516_s25, %s512_s17  ;;  %p520_p13 = scmp.lt.u32.totalorder %s512_s17, %s804_s19 }
  0x65   : > { %p514_p4 = pnand %p513_p0, %p876_p2 }
  0x66   : > { %p519_p6 = por %p518_p5, %p517_p3 }
  0x67   : > { %p515_p1 = pneg %p514_p4 }
  0x68   : > { %p521_p12 = por %p520_p13, %p519_p6 }
  0x6a   : > { %p522_p10 = pnand %p521_p12, %p515_p1 }
  0x6c   : > { %525 = shalt.err (!%p522_p10)
}
  0x6d   : > { %s577_s3 = smov 128   ;;  %s578_s29 = smov 256  }
  0x6e   : > { %s579_s20 = smov 8  }
  0x6f   : > { %384 = dma.vmem_to_hbm [thread:$0]  (%p876_p2), %s810_s14, 2048, %s804_s19, %s257_s28, %s577_s3, %s578_s29, %s579_s20  }
  0x70 PF: > { %s284_s5 = sand.u32 1, %s556_s9   ;;  %p877_p7 = scmp.ne.s32.totalorder %s871_s22, 0 }
  0x71   : > { %p878_p8 = scmp.ge.s32.totalorder %s568_s12, 2  ;;  %s285_s13 = scalar_lea.sflag [#allocation4], %s284_s5 }
  0x73   : > { %p394_p9 = pnand %p878_p8, %p877_p7 }
  0x75   : > { %551 = dma.done.wait (!%p394_p9), %s285_s13, 2048  }
  0x76   : > { %553 = vsyncadd (!%p394_p9), %s285_s13, 4294965248  ;;  %p18_p11 = scmp.ge.s32.totalorder %s620_s15, 4   ;;  %s879_s9 = smov %s560_s10 }
  0x77   : > { %s880_s10 = smov %s564_s11  ;;  %s881_s11 = smov %s632_s18 }
  0x78   : > { %s882_s12 = smov %s620_s15  ;;  %20 = sbr.rel (!%p18_p11) target bundleno = 7 (0x7), region = 86 }
  0x7f   :  { %290 = vsyncpa [#allocation3], 1 }
  0x80   :  { %292 = vsyncpa [#allocation3 + $0x1], 1 }
  0x81   :  { %293 = vsyncpa [#allocation6], 1 }
  0x82   :  { %295 = vsyncpa [#allocation6 + $0x1], 1 }
  0x83   :  { %296 = vsyncpa [#allocation4], 1 }
  0x84   :  { %298 = vsyncpa [#allocation4 + $0x1], 1 }

</bundles_post_ra>
